<compile_context>
chip_gen: v7x
topology: tpu7x:2x2x1
jax: 0.10.0
libtpu: 0.0.40
codegen_flags: <defaults>
</compile_context>

<pallas_src>
import jax
import jax.numpy as jnp
import numpy as np
from jax.experimental import pallas as pl
from jax.experimental.pallas import tpu as pltpu

KEY_OUTPUT = "metric_depth"
TOP_PERCENT = 0.2


def _cdiv(a, b):
    return -(-a // b)


def _nll_partials_kernel(x_ref, t_ref, v_ref, thr_ref, out_ref,
                         acc_dv, acc_lv, acc_cnt):
    """One (core, row-tile) step of the masked global reduction.

    x_ref/t_ref/v_ref : VMEM (tile_rows, lanes)   native dtype
    thr_ref           : VMEM (tile_rows, 1) f32   per-row threshold (-inf on pad rows)
    out_ref           : VMEM (1, 8, 128) f32      per-core packed [dv_sum, lv_sum, count]
    acc_*             : VMEM (acc_sub, lanes) f32 per-core running sums
    """
    r = pl.program_id(1)

    @pl.when(r == 0)
    def _init():
        acc_dv[...] = jnp.zeros_like(acc_dv)
        acc_lv[...] = jnp.zeros_like(acc_lv)
        acc_cnt[...] = jnp.zeros_like(acc_cnt)

    # TODO(synk): bf16 inputs could keep the sub/abs/compare chain in bf16 on
    # v6e/v7x; we upcast to f32 for exact parity with the f32 reference.
    x = x_ref[...].astype(jnp.float32)
    t = t_ref[...].astype(jnp.float32)
    v = v_ref[...].astype(jnp.float32)
    thr = thr_ref[...]                       # (tile_rows, 1) broadcasts over lanes

    diff = jnp.abs(t - x)
    # Garbage rows of ragged tiles have thr == -inf; NaN lane-padding gives
    # diff == NaN.  Both compare False, so no iota-based valid mask is needed.
    mask = diff <= thr
    dv = jnp.where(mask, diff * v, 0.0)
    lv = jnp.where(mask, jnp.log(v), 0.0)
    cnt = mask.astype(jnp.float32)

    tr, lanes = dv.shape
    if acc_dv.shape[0] == 8 and tr % 8 == 0:
        def fold(a):                          # (tile_rows, lanes) -> (8, lanes), VPU only
            return a.reshape(tr // 8, 8, lanes).sum(axis=0)
    else:
        def fold(a):
            return a.sum(axis=0, keepdims=True)

    acc_dv[...] += fold(dv)
    acc_lv[...] += fold(lv)
    acc_cnt[...] += fold(cnt)

    @pl.when(r == pl.num_programs(1) - 1)
    def _finalize():
        dv_s = jnp.sum(acc_dv[...])
        lv_s = jnp.sum(acc_lv[...])
        cnt_s = jnp.sum(acc_cnt[...])
        lane = jax.lax.broadcasted_iota(jnp.int32, out_ref.shape, 2)
        out_ref[...] = jnp.where(
            lane == 0, dv_s,
            jnp.where(lane == 1, lv_s,
                      jnp.where(lane == 2, cnt_s, 0.0)))


def _vmem_capacity_bytes():
    try:
        info = pltpu.get_tpu_info()
        cap = getattr(info, "vmem_capacity_bytes", None)
        if cap:
            return int(cap)
    except Exception:
        pass
    return 64 * 1024 * 1024          # conservative (v7x per-core)


def _pick_lanes(n):
    """Lane-dense layout for a per-batch flattened length n."""
    for cand in (1024, 512, 256, 128):
        if n % cand == 0:
            return cand, n
    # No 128-multiple factor: pad the flattened axis (masked via NaN prediction).
    lanes = 128
    return lanes, _cdiv(n, lanes) * lanes


def nll_loss(prediction, target, varinv, *,
             beta_logwar_weight=0.002, ignore_bigdiff=True, tile_rows=None):
    """JAX/Pallas equivalent of Nll_loss.forward (mask=None path)."""
    if isinstance(prediction, dict):
        prediction = prediction[KEY_OUTPUT]

    # TODO(synk): bilinear align_corners=True interpolation of mismatched
    # prediction/varinv resolutions not implemented; shapes must already match.
    assert prediction.shape == target.shape == varinv.shape, \
        "pre-resize prediction/varinv to target resolution"
    # TODO(synk): external `mask` argument (mask & top20 combination) not supported.

    B, C, H, W = target.shape
    x, t, v = prediction, target, varinv
    n = C * H * W

    if ignore_bigdiff:
        # get_mask_exlude_top20: threshold from the ::10,::10 downsampled |t-x|.
        # Slice FIRST, then subtract -> only ~1% of the data touched here.
        xd = x[:, :, ::10, ::10].astype(jnp.float32)
        td = t[:, :, ::10, ::10].astype(jnp.float32)
        dds = jnp.abs(td - xd)
        _, _, Hd, Wd = dds.shape
        flat = dds.reshape(B, -1)
        n_flat = flat.shape[1]
        thr_index = int((1.0 - TOP_PERCENT) * Hd * Wd)     # PyTorch parity (ignores C)
        k = n_flat - thr_index                             # k-th largest == sorted[thr_index]
        topk_vals, _ = jax.lax.top_k(flat, k)
        thr = topk_vals[:, -1].astype(jnp.float32)         # (B,)
    else:
        thr = jnp.full((B,), jnp.inf, dtype=jnp.float32)

    itemsize = max(jnp.dtype(a.dtype).itemsize for a in (x, t, v))
    lanes, n_pad = _pick_lanes(n)
    rows_b = n_pad // lanes
    total_rows = B * rows_b

    # Generation-aware tile sizing: large budget on 128 MiB VMEM (v5e/v6e),
    # conservative on 64 MiB (v7x).  Account for input double-buffers, the thr
    # column buffers and ~4 full-tile f32 compiler temporaries.
    vmem_cap = _vmem_capacity_bytes()
    in_budget = (40 << 20) if vmem_cap >= (100 << 20) else (18 << 20)
    bytes_per_row = 3 * 2 * lanes * itemsize + 4 * lanes * 4 + 2 * 128 * 4
    budget_rows = max(8, (in_budget // bytes_per_row) // 8 * 8)

    if tile_rows is None:
        if total_rows >= 8:
            tile_rows = min(budget_rows, (total_rows // 8) * 8)
        else:
            tile_rows = total_rows            # tiny input: single full-extent tile
    acc_sub = 8 if (tile_rows % 8 == 0) else 1

    total_tiles = _cdiv(total_rows, tile_rows)
    split = 2 if total_tiles >= 2 else 1      # dual-TensorCore split (v7x); no-op on 1-TC chips
    core_tiles = _cdiv(total_tiles, split)
    padded_thr_rows = split * core_tiles * tile_rows

    def _flatten(a, pad_value):
        a2 = a.reshape(B, n)
        if n_pad > n:
            a2 = jnp.pad(a2, ((0, 0), (0, n_pad - n)), constant_values=pad_value)
        return a2.reshape(total_rows, lanes)

    x2 = _flatten(x, float("nan"))   # NaN diff on padded tail -> excluded by mask
    t2 = _flatten(t, 0.0)
    v2 = _flatten(v, 1.0)

    # Per-row threshold column; -inf on rows past the real extent so ragged /
    # duplicated tiles contribute nothing.
    thr_col = jnp.broadcast_to(thr[:, None], (B, rows_b)).reshape(total_rows)
    if padded_thr_rows > total_rows:
        thr_col = jnp.concatenate(
            [thr_col,
             jnp.full((padded_thr_rows - total_rows,), -jnp.inf, jnp.float32)])
    thr_col = thr_col.reshape(padded_thr_rows, 1).astype(jnp.float32)

    last_tile = total_tiles - 1

    def data_map(c, r):
        tile = c * core_tiles + r
        # Clamp the (at most one) overflow tile of the core split; its rows are
        # masked out through the -inf threshold column, so no double counting.
        return (jnp.minimum(tile, last_tile), 0)

    def thr_map(c, r):
        return (c * core_tiles + r, 0)

    data_spec = pl.BlockSpec((tile_rows, lanes), data_map)
    thr_spec = pl.BlockSpec((tile_rows, 1), thr_map)
    out_spec = pl.BlockSpec((1, 8, 128), lambda c, r: (c, 0, 0))
    out_shape = jax.ShapeDtypeStruct((split, 8, 128), jnp.float32)

    in_buf = 3 * 2 * tile_rows * lanes * itemsize
    thr_buf = 2 * tile_rows * 128 * 4
    temps = 4 * tile_rows * lanes * 4               # headroom for f32 temporaries
    fixed = 2 * 8 * 128 * 4 + 3 * acc_sub * lanes * 4
    vmem_limit = in_buf + thr_buf + temps + fixed + (8 << 20)
    vmem_limit = int(min(max(vmem_limit, 32 << 20), int(0.85 * vmem_cap)))

    n_elems = total_rows * lanes
    cost = pl.CostEstimate(
        flops=9 * n_elems,
        transcendentals=n_elems,
        bytes_accessed=n_elems * 3 * itemsize + padded_thr_rows * 4
                       + split * 8 * 128 * 4)

    packed = pl.pallas_call(
        _nll_partials_kernel,
        out_shape=out_shape,
        grid_spec=pltpu.PrefetchScalarGridSpec(
            num_scalar_prefetch=0,
            grid=(split, core_tiles),
            in_specs=[data_spec, data_spec, data_spec, thr_spec],
            out_specs=out_spec,
            scratch_shapes=[pltpu.VMEM((acc_sub, lanes), jnp.float32),
                            pltpu.VMEM((acc_sub, lanes), jnp.float32),
                            pltpu.VMEM((acc_sub, lanes), jnp.float32)],
        ),
        compiler_params=pltpu.CompilerParams(
            dimension_semantics=("parallel", "arbitrary"),
            vmem_limit_bytes=vmem_limit),
        cost_estimate=cost,
    )(x2, t2, v2, thr_col)

    dv_sum = jnp.sum(packed[:, 0, 0])
    lv_sum = jnp.sum(packed[:, 0, 1])
    cnt = jnp.sum(packed[:, 0, 2])

    # (diff*varinv)[mask].mean() - beta * log(varinv[mask]).mean()
    # NOTE: empty mask -> cnt == 0 -> NaN loss, same as the PyTorch module.
    return dv_sum / cnt - beta_logwar_weight * (lv_sum / cnt)


def _nll_loss_ref(prediction, target, varinv, *, beta_logwar_weight=0.002,
                  ignore_bigdiff=True):
    """Pure-JAX reference mirroring the PyTorch semantics (mask=None path)."""
    if isinstance(prediction, dict):
        prediction = prediction[KEY_OUTPUT]
    x = prediction.astype(jnp.float32)
    t = target.astype(jnp.float32)
    v = varinv.astype(jnp.float32)
    diff = jnp.abs(t - x)
    if ignore_bigdiff:
        dds = diff[:, :, ::10, ::10]
        B, _, Hd, Wd = dds.shape
        sorted_flat = jnp.sort(dds.reshape(B, -1), axis=1)
        thr = sorted_flat[:, int((1.0 - TOP_PERCENT) * Hd * Wd)].reshape(B, 1, 1, 1)
        mask = diff <= thr
    else:
        mask = jnp.ones_like(diff, dtype=bool)
    cnt = jnp.sum(mask)
    term1 = jnp.sum(jnp.where(mask, diff * v, 0.0)) / cnt
    term2 = jnp.sum(jnp.where(mask, jnp.log(v), 0.0)) / cnt
    return term1 - beta_logwar_weight * term2


if __name__ == "__main__":
    def make_inputs(key, shape):
        k1, k2, k3 = jax.random.split(key, 3)
        target = jax.random.uniform(k1, shape, jnp.float32, 0.5, 10.0)
        pred = target + 0.5 * jax.random.normal(k2, shape, jnp.float32)
        varinv = jax.random.uniform(k3, shape, jnp.float32, 0.1, 2.0)
        return pred, target, varinv

    # 1) clean 128-multiple layout, default tiling
    pred, target, varinv = make_inputs(jax.random.PRNGKey(0), (2, 1, 64, 128))
    loss = jax.block_until_ready(nll_loss({"metric_depth": pred}, target, varinv))
    ref = jax.block_until_ready(_nll_loss_ref(pred, target, varinv))
    np.testing.assert_allclose(np.asarray(loss), np.asarray(ref), rtol=1e-3, atol=1e-5)

    # 2) forced small tiles -> multi-tile + dual-core split path
    loss2 = jax.block_until_ready(nll_loss(pred, target, varinv, tile_rows=8))
    np.testing.assert_allclose(np.asarray(loss2), np.asarray(ref), rtol=1e-3, atol=1e-5)

    # 3) odd spatial size -> lane padding + ragged last tile
    pred3, target3, varinv3 = make_inputs(jax.random.PRNGKey(1), (2, 1, 48, 100))
    loss3 = jax.block_until_ready(nll_loss(pred3, target3, varinv3))
    ref3 = jax.block_until_ready(_nll_loss_ref(pred3, target3, varinv3))
    np.testing.assert_allclose(np.asarray(loss3), np.asarray(ref3), rtol=1e-3, atol=1e-5)

    # 4) ignore_bigdiff=False path (plain means)
    loss4 = jax.block_until_ready(nll_loss(pred, target, varinv, ignore_bigdiff=False))
    ref4 = jax.block_until_ready(_nll_loss_ref(pred, target, varinv, ignore_bigdiff=False))
    np.testing.assert_allclose(np.asarray(loss4), np.asarray(ref4), rtol=1e-3, atol=1e-5)

    print("KERNEL_OK")
</pallas_src>

<mosaic_0001>
module attributes {stable_mosaic.version = 11 : i64} {
  func.func @_nll_partials_kernel(%arg0: i32, %arg1: i32, %arg2: memref<16x1024xf32, #tpu.memory_space<vmem>>, %arg3: memref<16x1024xf32, #tpu.memory_space<vmem>>, %arg4: memref<16x1024xf32, #tpu.memory_space<vmem>>, %arg5: memref<16x1xf32, #tpu.memory_space<vmem>>, %arg6: memref<1x8x128xf32, #tpu.memory_space<vmem>>, %arg7: memref<8x1024xf32, #tpu.memory_space<vmem>>, %arg8: memref<8x1024xf32, #tpu.memory_space<vmem>>, %arg9: memref<8x1024xf32, #tpu.memory_space<vmem>>) attributes {dimension_semantics = [#tpu.dimension_semantics<parallel>, #tpu.dimension_semantics<arbitrary>], iteration_bounds = array<i64: 1, 1>, scalar_prefetch = 0 : i64, scratch_operands = 3 : i64, tpu.core_type = #tpu.core_type<tc>, window_params = [{transform_indices = @transform_0, window_bounds = array<i64: 16, 1024>}, {transform_indices = @transform_1, window_bounds = array<i64: 16, 1024>}, {transform_indices = @transform_2, window_bounds = array<i64: 16, 1024>}, {transform_indices = @transform_3, window_bounds = array<i64: 16, 1>}, {transform_indices = @transform_4, window_bounds = array<i64: 1, 8, 128>}]} {
    %c0_i32 = arith.constant 0 : i32
    %0 = arith.cmpi eq, %arg1, %c0_i32 : i32
    %1 = arith.extui %0 : i1 to i32
    %c0_i32_0 = arith.constant 0 : i32
    %2 = arith.cmpi ne, %1, %c0_i32_0 : i32
    scf.if %2 {
      %cst_26 = arith.constant 0.000000e+00 : f32
      %37 = vector.broadcast %cst_26 : f32 to vector<8x1024xf32>
      %c0_27 = arith.constant 0 : index
      %c0_28 = arith.constant 0 : index
      %38 = vector.load %arg7[%c0_27, %c0_28] : memref<8x1024xf32, #tpu.memory_space<vmem>>, vector<8x1024xf32>
      tpu.vector_store %arg7[%c0_27, %c0_28], %37 {strides = array<i32>} : memref<8x1024xf32, #tpu.memory_space<vmem>>, vector<8x1024xf32>,
      %cst_29 = arith.constant 0.000000e+00 : f32
      %39 = vector.broadcast %cst_29 : f32 to vector<8x1024xf32>
      %c0_30 = arith.constant 0 : index
      %c0_31 = arith.constant 0 : index
      %40 = vector.load %arg8[%c0_30, %c0_31] : memref<8x1024xf32, #tpu.memory_space<vmem>>, vector<8x1024xf32>
      tpu.vector_store %arg8[%c0_30, %c0_31], %39 {strides = array<i32>} : memref<8x1024xf32, #tpu.memory_space<vmem>>, vector<8x1024xf32>,
      %cst_32 = arith.constant 0.000000e+00 : f32
      %41 = vector.broadcast %cst_32 : f32 to vector<8x1024xf32>
      %c0_33 = arith.constant 0 : index
      %c0_34 = arith.constant 0 : index
      %42 = vector.load %arg9[%c0_33, %c0_34] : memref<8x1024xf32, #tpu.memory_space<vmem>>, vector<8x1024xf32>
      tpu.vector_store %arg9[%c0_33, %c0_34], %41 {strides = array<i32>} : memref<8x1024xf32, #tpu.memory_space<vmem>>, vector<8x1024xf32>,
    } else {
    }
    %c0 = arith.constant 0 : index
    %c0_1 = arith.constant 0 : index
    %3 = vector.load %arg2[%c0, %c0_1] : memref<16x1024xf32, #tpu.memory_space<vmem>>, vector<16x1024xf32>
    %c0_2 = arith.constant 0 : index
    %c0_3 = arith.constant 0 : index
    %4 = vector.load %arg3[%c0_2, %c0_3] : memref<16x1024xf32, #tpu.memory_space<vmem>>, vector<16x1024xf32>
    %c0_4 = arith.constant 0 : index
    %c0_5 = arith.constant 0 : index
    %5 = vector.load %arg4[%c0_4, %c0_5] : memref<16x1024xf32, #tpu.memory_space<vmem>>, vector<16x1024xf32>
    %c0_6 = arith.constant 0 : index
    %c0_7 = arith.constant 0 : index
    %6 = vector.load %arg5[%c0_6, %c0_7] : memref<16x1xf32, #tpu.memory_space<vmem>>, vector<16x1xf32>
    %7 = arith.subf %4, %3 : vector<16x1024xf32>
    %8 = math.absf %7 : vector<16x1024xf32>
    %9 = vector.broadcast %6 : vector<16x1xf32> to vector<16x1024xf32>
    %10 = arith.cmpf ole, %8, %9 : vector<16x1024xf32>
    %11 = arith.mulf %8, %5 : vector<16x1024xf32>
    %cst = arith.constant 0.000000e+00 : f32
    %12 = vector.broadcast %cst : f32 to vector<16x1024xf32>
    %13 = arith.select %10, %11, %12 : vector<16x1024xi1>, vector<16x1024xf32>
    %14 = math.log %5 : vector<16x1024xf32>
    %cst_8 = arith.constant 0.000000e+00 : f32
    %15 = vector.broadcast %cst_8 : f32 to vector<16x1024xf32>
    %16 = arith.select %10, %14, %15 : vector<16x1024xi1>, vector<16x1024xf32>
    %17 = arith.extui %10 : vector<16x1024xi1> to vector<16x1024xi32>
    %18 = arith.sitofp %17 : vector<16x1024xi32> to vector<16x1024xf32>
    %c0_9 = arith.constant 0 : index
    %c0_10 = arith.constant 0 : index
    %19 = vector.load %arg7[%c0_9, %c0_10] : memref<8x1024xf32, #tpu.memory_space<vmem>>, vector<8x1024xf32>
    %20 = vector.shape_cast %13 : vector<16x1024xf32> to vector<2x8x1024xf32>
    %cst_11 = arith.constant dense<0.000000e+00> : vector<8x1024xf32>
    %21 = vector.multi_reduction <add>, %20, %cst_11 [0] : vector<2x8x1024xf32> to vector<8x1024xf32>
    %22 = arith.addf %19, %21 : vector<8x1024xf32>
    %c0_12 = arith.constant 0 : index
    %c0_13 = arith.constant 0 : index
    %23 = vector.load %arg7[%c0_12, %c0_13] : memref<8x1024xf32, #tpu.memory_space<vmem>>, vector<8x1024xf32>
    tpu.vector_store %arg7[%c0_12, %c0_13], %22 {strides = array<i32>} : memref<8x1024xf32, #tpu.memory_space<vmem>>, vector<8x1024xf32>,
    %c0_14 = arith.constant 0 : index
    %c0_15 = arith.constant 0 : index
    %24 = vector.load %arg8[%c0_14, %c0_15] : memref<8x1024xf32, #tpu.memory_space<vmem>>, vector<8x1024xf32>
    %25 = vector.shape_cast %16 : vector<16x1024xf32> to vector<2x8x1024xf32>
    %cst_16 = arith.constant dense<0.000000e+00> : vector<8x1024xf32>
    %26 = vector.multi_reduction <add>, %25, %cst_16 [0] : vector<2x8x1024xf32> to vector<8x1024xf32>
    %27 = arith.addf %24, %26 : vector<8x1024xf32>
    %c0_17 = arith.constant 0 : index
    %c0_18 = arith.constant 0 : index
    %28 = vector.load %arg8[%c0_17, %c0_18] : memref<8x1024xf32, #tpu.memory_space<vmem>>, vector<8x1024xf32>
    tpu.vector_store %arg8[%c0_17, %c0_18], %27 {strides = array<i32>} : memref<8x1024xf32, #tpu.memory_space<vmem>>, vector<8x1024xf32>,
    %c0_19 = arith.constant 0 : index
    %c0_20 = arith.constant 0 : index
    %29 = vector.load %arg9[%c0_19, %c0_20] : memref<8x1024xf32, #tpu.memory_space<vmem>>, vector<8x1024xf32>
    %30 = vector.shape_cast %18 : vector<16x1024xf32> to vector<2x8x1024xf32>
    %cst_21 = arith.constant dense<0.000000e+00> : vector<8x1024xf32>
    %31 = vector.multi_reduction <add>, %30, %cst_21 [0] : vector<2x8x1024xf32> to vector<8x1024xf32>
    %32 = arith.addf %29, %31 : vector<8x1024xf32>
    %c0_22 = arith.constant 0 : index
    %c0_23 = arith.constant 0 : index
    %33 = vector.load %arg9[%c0_22, %c0_23] : memref<8x1024xf32, #tpu.memory_space<vmem>>, vector<8x1024xf32>
    tpu.vector_store %arg9[%c0_22, %c0_23], %32 {strides = array<i32>} : memref<8x1024xf32, #tpu.memory_space<vmem>>, vector<8x1024xf32>,
    %c0_i32_24 = arith.constant 0 : i32
    %34 = arith.cmpi eq, %arg1, %c0_i32_24 : i32
    %35 = arith.extui %34 : i1 to i32
    %c0_i32_25 = arith.constant 0 : i32
    %36 = arith.cmpi ne, %35, %c0_i32_25 : i32
    scf.if %36 {
      %c0_26 = arith.constant 0 : index
      %c0_27 = arith.constant 0 : index
      %37 = vector.load %arg7[%c0_26, %c0_27] : memref<8x1024xf32, #tpu.memory_space<vmem>>, vector<8x1024xf32>
      %38 = vector.shape_cast %37 : vector<8x1024xf32> to vector<1x8x1024xf32>
      %cst_28 = arith.constant dense<0.000000e+00> : vector<1xf32>
      %39 = vector.multi_reduction <add>, %38, %cst_28 [1, 2] : vector<1x8x1024xf32> to vector<1xf32>
      %40 = vector.shape_cast %39 : vector<1xf32> to vector<1x1x1xf32>
      %41 = vector.extract %40[0, 0, 0] : f32 from vector<1x1x1xf32>
      %c0_29 = arith.constant 0 : index
      %c0_30 = arith.constant 0 : index
      %42 = vector.load %arg8[%c0_29, %c0_30] : memref<8x1024xf32, #tpu.memory_space<vmem>>, vector<8x1024xf32>
      %43 = vector.shape_cast %42 : vector<8x1024xf32> to vector<1x8x1024xf32>
      %cst_31 = arith.constant dense<0.000000e+00> : vector<1xf32>
      %44 = vector.multi_reduction <add>, %43, %cst_31 [1, 2] : vector<1x8x1024xf32> to vector<1xf32>
      %45 = vector.shape_cast %44 : vector<1xf32> to vector<1x1x1xf32>
      %46 = vector.extract %45[0, 0, 0] : f32 from vector<1x1x1xf32>
      %c0_32 = arith.constant 0 : index
      %c0_33 = arith.constant 0 : index
      %47 = vector.load %arg9[%c0_32, %c0_33] : memref<8x1024xf32, #tpu.memory_space<vmem>>, vector<8x1024xf32>
      %48 = vector.shape_cast %47 : vector<8x1024xf32> to vector<1x8x1024xf32>
      %cst_34 = arith.constant dense<0.000000e+00> : vector<1xf32>
      %49 = vector.multi_reduction <add>, %48, %cst_34 [1, 2] : vector<1x8x1024xf32> to vector<1xf32>
      %50 = vector.shape_cast %49 : vector<1xf32> to vector<1x1x1xf32>
      %51 = vector.extract %50[0, 0, 0] : f32 from vector<1x1x1xf32>
      %52 = tpu.iota {dimensions = array<i32: 2>} : vector<1x8x128xi32>
      %c0_i32_35 = arith.constant 0 : i32
      %53 = vector.broadcast %c0_i32_35 : i32 to vector<1x8x128xi32>
      %54 = arith.cmpi eq, %52, %53 : vector<1x8x128xi32>
      %c1_i32 = arith.constant 1 : i32
      %55 = vector.broadcast %c1_i32 : i32 to vector<1x8x128xi32>
      %56 = arith.cmpi eq, %52, %55 : vector<1x8x128xi32>
      %c2_i32 = arith.constant 2 : i32
      %57 = vector.broadcast %c2_i32 : i32 to vector<1x8x128xi32>
      %58 = arith.cmpi eq, %52, %57 : vector<1x8x128xi32>
      %cst_36 = arith.constant 0.000000e+00 : f32
      %59 = vector.broadcast %51 : f32 to vector<1x8x128xf32>
      %60 = vector.broadcast %cst_36 : f32 to vector<1x8x128xf32>
      %61 = arith.select %58, %59, %60 : vector<1x8x128xi1>, vector<1x8x128xf32>
      %62 = vector.broadcast %46 : f32 to vector<1x8x128xf32>
      %63 = arith.select %56, %62, %61 : vector<1x8x128xi1>, vector<1x8x128xf32>
      %64 = vector.broadcast %41 : f32 to vector<1x8x128xf32>
      %65 = arith.select %54, %64, %63 : vector<1x8x128xi1>, vector<1x8x128xf32>
      %c0_37 = arith.constant 0 : index
      %c0_38 = arith.constant 0 : index
      %c0_39 = arith.constant 0 : index
      %66 = vector.load %arg6[%c0_37, %c0_38, %c0_39] : memref<1x8x128xf32, #tpu.memory_space<vmem>>, vector<1x8x128xf32>
      tpu.vector_store %arg6[%c0_37, %c0_38, %c0_39], %65 {strides = array<i32>} : memref<1x8x128xf32, #tpu.memory_space<vmem>>, vector<1x8x128xf32>,
    } else {
    }
    return
  }
  func.func @transform_0(%arg0: i32, %arg1: i32) -> (i32, i32) {
    %c1_i32 = arith.constant 1 : i32
    %0 = arith.muli %arg0, %c1_i32 : i32
    %1 = arith.addi %0, %arg1 : i32
    %c0_i32 = arith.constant 0 : i32
    %2 = arith.minsi %1, %c0_i32 : i32
    %c0_i32_0 = arith.constant 0 : i32
    %c0_i32_1 = arith.constant 0 : i32
    return %2, %c0_i32_0 : i32, i32
  }
  func.func @transform_1(%arg0: i32, %arg1: i32) -> (i32, i32) {
    %c1_i32 = arith.constant 1 : i32
    %0 = arith.muli %arg0, %c1_i32 : i32
    %1 = arith.addi %0, %arg1 : i32
    %c0_i32 = arith.constant 0 : i32
    %2 = arith.minsi %1, %c0_i32 : i32
    %c0_i32_0 = arith.constant 0 : i32
    %c0_i32_1 = arith.constant 0 : i32
    return %2, %c0_i32_0 : i32, i32
  }
  func.func @transform_2(%arg0: i32, %arg1: i32) -> (i32, i32) {
    %c1_i32 = arith.constant 1 : i32
    %0 = arith.muli %arg0, %c1_i32 : i32
    %1 = arith.addi %0, %arg1 : i32
    %c0_i32 = arith.constant 0 : i32
    %2 = arith.minsi %1, %c0_i32 : i32
    %c0_i32_0 = arith.constant 0 : i32
    %c0_i32_1 = arith.constant 0 : i32
    return %2, %c0_i32_0 : i32, i32
  }
  func.func @transform_3(%arg0: i32, %arg1: i32) -> (i32, i32) {
    %c1_i32 = arith.constant 1 : i32
    %0 = arith.muli %arg0, %c1_i32 : i32
    %1 = arith.addi %0, %arg1 : i32
    %c0_i32 = arith.constant 0 : i32
    %c0_i32_0 = arith.constant 0 : i32
    return %1, %c0_i32 : i32, i32
  }
  func.func @transform_4(%arg0: i32, %arg1: i32) -> (i32, i32, i32) {
    %c0_i32 = arith.constant 0 : i32
    %c0_i32_0 = arith.constant 0 : i32
    %c0_i32_1 = arith.constant 0 : i32
    return %arg0, %c0_i32, %c0_i32_0 : i32, i32, i32
  }
}

</mosaic_0001>

<bundles_post_ra>
// kernel: tpu_custom_call.1
= control target key start
LH: loop header
LB: loop body
LE: loop exit
PB: predicated region body
PF: predicated region fallthrough
CT: control target
= control target key end

     0   :  { %9 = vsyncpa [#allocation6], 0  ;;  %s1234_s0 = inlined_call_operand.hbm [shape: f32[16,1024], index: 0, kind: input, shape index: {}]   ;;  %s1235_s1 = inlined_call_operand.hbm [shape: f32[16,1024], index: 1, kind: input, shape index: {}]   ;;  %s1236_s2 = inlined_call_operand.hbm [shape: f32[16,1024], index: 2, kind: input, shape index: {}]   ;;  %s1237_s3 = inlined_call_operand.vmem [shape: f32[16,1], index: 3, kind: input, shape index: {}]   ;;  %s1238_s4 = inlined_call_operand.hbm [shape: f32[1,8,128], index: 4, kind: output, shape index: {}]  }
   0x1   :  { %10 = vsyncpa [#allocation9], 0 }
   0x2   :  { %11 = vsyncpa [#allocation7], 0  ;;  %s730_s15 = smov [#allocation8]   ;;  %s731_s17 = smov [#allocation5]  }
   0x3   :  { %s43_s16 = sshll.u32 %s730_s15, 4  ;;  %s24_s18 = sshll.u32 %s731_s17, 4  ;;  %s44_s16 = int_to_ptr.vmem [resolvable:$true] %s43_s16  ;;  %s763_s18 = int_to_ptr.vmem [resolvable:$true] %s24_s18 }
   0x4   :  { %s636_s21 = scalar_lea.hbm %s1235_s1, 2048 }
   0x5   :  { %p637_p0 = scmp.ne.s32.totalorder %s1235_s1, %s636_s21  ;;  %p640_p1 = scmp.lt.u32.totalorder %s636_s21, %s1235_s1 }
   0x7   :  { %p642_p2 = pnand %p640_p1, %p637_p0 }
   0x9   :  { %645 = shalt.err (!%p642_p2)
}
   0xa   :  { %s646_s26 = scalar_lea.vmem %s44_s16, 2048  ;;  %p651_p4 = scmp.lt.s32.totalorder %s44_s16, %s44_s16 }
   0xb   :  { %p647_p3 = scmp.ne.s32.totalorder %s44_s16, %s646_s26  ;;  %p652_p5 = scmp.lt.s32.totalorder %s646_s26, %s646_s26 }
   0xd   :  { %p653_p6 = por %p652_p5, %p651_p4 }
   0xf   :  { %p654_p7 = pnand %p653_p6, %p647_p3 }
  0x11   :  { %657 = shalt.err (!%p654_p7)
}
  0x12   :  { %s732_s27 = smov 1024   ;;  %s733_s28 = smov 64  }
  0x13   :  { %49 = dma.hbm_to_vmem [thread:$0]  %s1235_s1, 2048, %s44_s16, [#allocation9], %s732_s27, %s732_s27, %s733_s28  }
  0x14   :  { %s658_s7 = scalar_lea.hbm %s1234_s0, 2048 }
  0x15   :  { %p659_p8 = scmp.ne.s32.totalorder %s1234_s0, %s658_s7  ;;  %p662_p9 = scmp.lt.u32.totalorder %s658_s7, %s1234_s0 }
  0x17   :  { %p664_p10 = pnand %p662_p9, %p659_p8 }
  0x19   :  { %667 = shalt.err (!%p664_p10)
}
  0x1a   :  { %s668_s12 = scalar_lea.vmem %s763_s18, 2048  ;;  %p673_p12 = scmp.lt.s32.totalorder %s763_s18, %s763_s18 }
  0x1b   :  { %p669_p11 = scmp.ne.s32.totalorder %s763_s18, %s668_s12  ;;  %p674_p13 = scmp.lt.s32.totalorder %s668_s12, %s668_s12 }
  0x1d   :  { %p675_p0 = por %p674_p13, %p673_p12 }
  0x1f   :  { %p676_p1 = pnand %p675_p0, %p669_p11 }
  0x21   :  { %679 = shalt.err (!%p676_p1)
}
  0x22   :  { %30 = dma.hbm_to_vmem [thread:$0]  %s1234_s0, 2048, %s763_s18, [#allocation6], %s732_s27, %s732_s27, %s733_s28  }
  0x23   :  { %s734_s14 = smov [#allocation10]   ;;  %s680_s19 = scalar_lea.hbm %s1236_s2, 2048 }
  0x24   :  { %s62_s15 = sshll.u32 %s734_s14, 4  ;;  %p681_p2 = scmp.ne.s32.totalorder %s1236_s2, %s680_s19  ;;  %s63_s15 = int_to_ptr.vmem [resolvable:$true] %s62_s15 }
  0x25   :  { %p684_p3 = scmp.lt.u32.totalorder %s680_s19, %s1236_s2 }
  0x27   :  { %p686_p4 = pnand %p684_p3, %p681_p2 }
  0x29   :  { %689 = shalt.err (!%p686_p4)
}
  0x2a   :  { %s690_s24 = scalar_lea.vmem %s63_s15, 2048  ;;  %p695_p6 = scmp.lt.s32.totalorder %s63_s15, %s63_s15 }
  0x2b   :  { %p691_p5 = scmp.ne.s32.totalorder %s63_s15, %s690_s24  ;;  %p696_p7 = scmp.lt.s32.totalorder %s690_s24, %s690_s24 }
  0x2d   :  { %p697_p8 = por %p696_p7, %p695_p6 }
  0x2f   :  { %p698_p9 = pnand %p697_p8, %p691_p5 }
  0x31   :  { %701 = shalt.err (!%p698_p9)
}
  0x32   :  { %68 = dma.hbm_to_vmem [thread:$0]  %s1236_s2, 2048, %s63_s15, [#allocation9], %s732_s27, %s732_s27, %s733_s28  }
  0x33   :  { %724 = dma.done.wait [#allocation6], 2048  }
  0x34   :  { %725 = vsyncadd [#allocation6], 4294965248 }
  0x35   :  { %726 = dma.done.wait [#allocation9], 4096  }
  0x36   :  { %727 = vsyncadd [#allocation9], 4294963200  ;;  %v735_v0 = vmov 0   ;;  %v190_v1 = vld [vmem:[%s1237_s3] sm:$0xff]  ;;  %v191_v2 = vld [vmem:[%s1237_s3 + $0x8] sm:$0xff]  ;;  %s737_s28 = smov [#allocation11]  }
  0x37   :  { %603 = vset.pattern.permute.xlu0 %v735_v0  ;;  %v821_v3 = vld [vmem:[#allocation10] sm:$0xff]  ;;  %v823_v4 = vld [vmem:[#allocation10 + $0x8] sm:$0xff]  ;;  %v825_v5 = vld [vmem:[#allocation10 + $0x10] sm:$0xff]  ;;  %s551_s5 = sshll.u32 %s737_s28, 4  ;;  %s552_s5 = int_to_ptr.vmem [resolvable:$true] %s551_s5 }
  0x38   :  { %226 = vperm.xlu0 %603, %v190_v1   ;;  %v827_v6 = vld [vmem:[#allocation10 + $0x18] sm:$0xff]  ;;  %604 = vlog2.f32 %v821_v3  ;;  %v142_v7 = vld [vmem:[#allocation5] sm:$0xff]  ;;  %v833_v9 = vld [vmem:[#allocation5 + $0x8] sm:$0xff]  ;;  %s702_s6 = scalar_lea.vmem %s552_s5, 128  ;;  %p707_p11 = scmp.lt.s32.totalorder %s552_s5, %s552_s5 }
  0x39   :  { %v830_v8 = vld [vmem:[#allocation10 + $0x20] sm:$0xff]  ;;  %606 = vlog2.f32 %v823_v4  ;;  %v835_v10 = vld [vmem:[#allocation5 + $0x10] sm:$0xff]  ;;  %v837_v11 = vld [vmem:[#allocation5 + $0x18] sm:$0xff]  ;;  %p703_p10 = scmp.ne.s32.totalorder %s552_s5, %s702_s6  ;;  %p708_p12 = scmp.lt.s32.totalorder %s702_s6, %s702_s6 }
  0x3a   :  { %v158_v12 = vld [vmem:[#allocation8] sm:$0xff]  ;;  %v159_v13 = vld [vmem:[#allocation8 + $0x8] sm:$0xff]  ;;  %608 = vlog2.f32 %v825_v5  ;;  %v846_v17 = vld [vmem:[#allocation5 + $0x30] sm:$0xff] }
  0x3b   :  { %v839_v14 = vld [vmem:[#allocation10 + $0x28] sm:$0xff]  ;;  %v842_v15 = vld [vmem:[#allocation5 + $0x20] sm:$0xff]  ;;  %v160_v18 = vld [vmem:[#allocation8 + $0x10] sm:$0xff]  ;;  %610 = vlog2.f32 %v827_v6  ;;  %v192_v31 = vsub.f32 %v158_v12, %v142_v7  ;;  %v193_v42 = vsub.f32 %v159_v13, %v833_v9  ;;  %p709_p13 = por %p708_p12, %p707_p11 }
  0x3c   :  { %231 = vperm.xlu0 %603, %v191_v2   ;;  %v844_v16 = vld [vmem:[#allocation5 + $0x28] sm:$0xff]  ;;  %v848_v19 = vld [vmem:[#allocation8 + $0x18] sm:$0xff]  ;;  %v850_v20 = vld [vmem:[#allocation10 + $0x30] sm:$0xff]  ;;  %612 = vlog2.f32 %v830_v8  ;;  %v194_v43 = vsub.f32 %v160_v18, %v835_v10 }
  0x3d   :  { %v853_v21 = vld [vmem:[#allocation5 + $0x38] sm:$0xff]  ;;  %v855_v22 = vld [vmem:[#allocation5 + $0x40] sm:$0xff]  ;;  %v163_v24 = vld [vmem:[#allocation8 + $0x28] sm:$0xff]  ;;  %614 = vlog2.f32 %v839_v14  ;;  %v195_v44 = vsub.f32 %v848_v19, %v837_v11  ;;  %v885_v56 = vand.u32 2147483647, %v192_v31  ;;  %p710_p0 = pnand %p709_p13, %p703_p10 }
  0x3e   :  { %v162_v23 = vld [vmem:[#allocation8 + $0x20] sm:$0xff]  ;;  %v860_v26 = vld [vmem:[#allocation5 + $0x48] sm:$0xff]  ;;  %v862_v27 = vld [vmem:[#allocation5 + $0x50] sm:$0xff]  ;;  %616 = vlog2.f32 %v850_v20  ;;  %v197_v49 = vsub.f32 %v163_v24, %v844_v16  ;;  %v892_v2 = vand.u32 2147483647, %v193_v42 }
  0x3f   :  { %v857_v25 = vld [vmem:[#allocation10 + $0x40] sm:$0xff]  ;;  %v864_v28 = vld [vmem:[#allocation5 + $0x58] sm:$0xff]  ;;  %v164_v29 = vld [vmem:[#allocation8 + $0x30] sm:$0xff]  ;;  %v196_v48 = vsub.f32 %v162_v23, %v842_v15  ;;  %v894_v11 = vand.u32 2147483647, %v194_v43 }
  0x40   :  { %v165_v30 = vld [vmem:[#allocation8 + $0x38] sm:$0xff]  ;;  %v866_v32 = vld [vmem:[#allocation10 + $0x48] sm:$0xff]  ;;  %v154_v33 = vld [vmem:[#allocation5 + $0x60] sm:$0xff]  ;;  %618 = vlog2.f32 %v857_v25  ;;  %v198_v50 = vsub.f32 %v164_v29, %v846_v17  ;;  %v896_v13 = vand.u32 2147483647, %v195_v44 }
  0x41   :  { %v155_v34 = vld [vmem:[#allocation5 + $0x68] sm:$0xff]  ;;  %v166_v35 = vld [vmem:[#allocation8 + $0x40] sm:$0xff]  ;;  %v869_v37 = vld [vmem:[#allocation10 + $0x50] sm:$0xff]  ;;  %620 = vlog2.f32 %v866_v32  ;;  %v199_v54 = vsub.f32 %v165_v30, %v853_v21  ;;  %v898_v15 = vand.u32 2147483647, %v196_v48 }
  0x42   :  { %v167_v36 = vld [vmem:[#allocation8 + $0x48] sm:$0xff]  ;;  %v156_v38 = vld [vmem:[#allocation5 + $0x70] sm:$0xff]  ;;  %v157_v39 = vld [vmem:[#allocation5 + $0x78] sm:$0xff]  ;;  %v200_v55 = vsub.f32 %v166_v35, %v855_v22  ;;  %622 = vlog2.f32 %v869_v37  ;;  %v605_v58 = vpop.eup %604  ;;  %v900_v16 = vand.u32 2147483647, %v197_v49  ;;  %v928_v35 = vmul.f32 %v892_v2, %v823_v4 }
  0x43   :  { %v168_v40 = vld [vmem:[#allocation8 + $0x50] sm:$0xff]  ;;  %v169_v41 = vld [vmem:[#allocation8 + $0x58] sm:$0xff]  ;;  %v170_v46 = vld [vmem:[#allocation8 + $0x60] sm:$0xff]  ;;  %v201_v59 = vsub.f32 %v167_v36, %v860_v26  ;;  %v607_v63 = vpop.eup %606  ;;  %v902_v18 = vand.u32 2147483647, %v198_v50  ;;  %v932_v36 = vmul.f32 %v894_v11, %v825_v5 }
  0x44   :  { %v876_v45 = vld [vmem:[#allocation10 + $0x58] sm:$0xff]  ;;  %v171_v47 = vld [vmem:[#allocation8 + $0x68] sm:$0xff]  ;;  %v186_v51 = vld [vmem:[#allocation10 + $0x60] sm:$0xff]  ;;  %v202_v60 = vsub.f32 %v168_v40, %v862_v27  ;;  %v203_v61 = vsub.f32 %v169_v41, %v864_v28  ;;  %v204_v0 = vsub.f32 %v170_v46, %v154_v33  ;;  %v609_v7 = vpop.eup %608  ;;  %v904_v19 = vand.u32 2147483647, %v199_v54 }
  0x45   :  { %v172_v52 = vld [vmem:[#allocation8 + $0x70] sm:$0xff]  ;;  %v173_v53 = vld [vmem:[#allocation8 + $0x78] sm:$0xff]  ;;  %v187_v57 = vld [vmem:[#allocation10 + $0x68] sm:$0xff]  ;;  %624 = vlog2.f32 %v876_v45  ;;  %v205_v1 = vsub.f32 %v171_v47, %v155_v34  ;;  %v611_v12 = vpop.eup %610  ;;  %v906_v21 = vand.u32 2147483647, %v200_v55  ;;  %v924_v34 = vmul.f32 %v885_v56, %v821_v3 }
  0x46   :  { %v188_v62 = vld [vmem:[#allocation10 + $0x70] sm:$0xff]  ;;  %626 = vlog2.f32 %v186_v51  ;;  %v206_v9 = vsub.f32 %v172_v52, %v156_v38  ;;  %v207_v10 = vsub.f32 %v173_v53, %v157_v39  ;;  %v613_v17 = vpop.eup %612  ;;  %v908_v23 = vand.u32 2147483647, %v201_v59  ;;  %v181_v39 = vld [vmem:[#allocation10 + $0x38] sm:$0xff] }
  0x47   :  { %628 = vlog2.f32 %v187_v57  ;;  %v615_v22 = vpop.eup %614  ;;  %v910_v24 = vand.u32 2147483647, %v202_v60  ;;  %v912_v26 = vand.u32 2147483647, %v203_v61  ;;  %v914_v28 = vand.u32 2147483647, %v204_v0 }
  0x48   :  { %630 = vlog2.f32 %v188_v62  ;;  %v617_v27 = vpop.eup %616  ;;  %v916_v29 = vand.u32 2147483647, %v205_v1  ;;  %v918_v30 = vand.u32 2147483647, %v206_v9  ;;  %v920_v33 = vand.u32 2147483647, %v207_v10 }
  0x49   :  { %v936_v40 = vmul.f32 %v896_v13, %v827_v6  ;;  %v940_v41 = vmul.f32 %v898_v15, %v830_v8  ;;  %v944_v3 = vmul.f32 %v900_v16, %v839_v14  ;;  %v948_v4 = vmul.f32 %v902_v18, %v850_v20  ;;  %v189_v20 = vld [vmem:[#allocation10 + $0x78] sm:$0xff] }
  0x4a   :  { %v619_v31 = vpop.eup %618  ;;  %v951_v42 = vmul.f32 %v904_v19, %v181_v39  ;;  %v955_v6 = vmul.f32 %v906_v21, %v857_v25  ;;  %v959_v8 = vmul.f32 %v908_v23, %v866_v32  ;;  %v963_v14 = vmul.f32 %v910_v24, %v869_v37 }
  0x4b   :  { %v621_v38 = vpop.eup %620  ;;  %v969_v46 = vmul.f32 %v912_v26, %v876_v45  ;;  %v972_v47 = vmul.f32 %v914_v28, %v186_v51  ;;  %v975_v25 = vmul.f32 %v916_v29, %v187_v57  ;;  %v978_v32 = vmul.f32 %v918_v30, %v188_v62 }
  0x4c   :  { %v623_v5 = vpop.eup %622  ;;  %v981_v37 = vmul.f32 %v920_v33, %v189_v20  ;;  %v983_v49 = vmul.f32 0.6931472, %v605_v58  ;;  %v985_v50 = vmul.f32 0.6931472, %v607_v63  ;;  %v987_v52 = vmul.f32 0.6931472, %v609_v7 }
  0x4d   :  { %632 = vlog2.f32 %v181_v39  ;;  %v989_v51 = vmul.f32 0.6931472, %v611_v12  ;;  %v991_v53 = vmul.f32 0.6931472, %v613_v17  ;;  %v993_v54 = vmul.f32 0.6931472, %v615_v22 }
  0x4e   :  { %634 = vlog2.f32 %v189_v20  ;;  %v995_v57 = vmul.f32 0.6931472, %v617_v27  ;;  %v997_v59 = vmul.f32 0.6931472, %v619_v31  ;;  %v999_v58 = vmul.f32 0.6931472, %v621_v38 }
  0x4f   :  { %v625_v43 = vpop.eup %624  ;;  %v1005_v61 = vmul.f32 0.6931472, %v623_v5  ;;  %v736_v7 = vmov 0.0  }
  0x50   :  { %v627_v48 = vpop.eup %626  ;;  %1239 = vst [vmem:[#allocation15_spill] sm:$0xff] %v995_v57  ;;  %v1007_v62 = vmul.f32 0.6931472, %v625_v43 }
  0x51   :  { %v629_v45 = vpop.eup %628  ;;  %v1009_v63 = vmul.f32 0.6931472, %v627_v48 }
  0x52   :  { %v631_v55 = vpop.eup %630  ;;  %v1023_v0 = vmul.f32 0.6931472, %v629_v45 }
  0x53   :  { %v1025_v1 = vmul.f32 0.6931472, %v631_v55 }
  0x57   :  { %v1067_v48 = vpop.eup %632 }
  0xb7   :  { %v965_v44 = vpop.permute.xlu0 %226 }
  0xb8   :  { %vm234_vm0 = vcmp.le.f32.partialorder %v885_v56, %v965_v44  ;;  %vm235_vm1 = vcmp.le.f32.partialorder %v892_v2, %v965_v44  ;;  %vm236_vm5 = vcmp.le.f32.partialorder %v894_v11, %v965_v44  ;;  %vm237_vm6 = vcmp.le.f32.partialorder %v896_v13, %v965_v44 }
  0xb9   :  { %vm238_vm7 = vcmp.le.f32.partialorder %v898_v15, %v965_v44  ;;  %v573_v12 = vsel %vm234_vm0, 1.0, %v736_v7  ;;  %v574_v17 = vsel %vm235_vm1, 1.0, %v736_v7  ;;  %vm239_vm10 = vcmp.le.f32.partialorder %v900_v16, %v965_v44 }
  0xba   :  { %vm240_vm11 = vcmp.le.f32.partialorder %v902_v18, %v965_v44  ;;  %vm241_vm12 = vcmp.le.f32.partialorder %v904_v19, %v965_v44  ;;  %v575_v38 = vsel %vm236_vm5, 1.0, %v736_v7  ;;  %v576_v45 = vsel %vm237_vm6, 1.0, %v736_v7 }
  0xbb   :  { %v1001_v60 = vpop.permute.xlu0 %231  ;;  %v577_v55 = vsel %vm238_vm7, 1.0, %v736_v7  ;;  %v316_v2 = vsel %vm236_vm5, %v987_v52, 0.0  ;;  %v318_v13 = vsel %vm238_vm7, %v991_v53, 0.0 }
  0xbc   :  { %vm242_vm2 = vcmp.le.f32.partialorder %v906_v21, %v1001_v60  ;;  %vm243_vm3 = vcmp.le.f32.partialorder %v908_v23, %v1001_v60  ;;  %vm244_vm4 = vcmp.le.f32.partialorder %v910_v24, %v1001_v60  ;;  %vm245_vm8 = vcmp.le.f32.partialorder %v912_v26, %v1001_v60 }
  0xbd   :  { %v581_v9 = vsel %vm242_vm2, 1.0, %v736_v7  ;;  %v582_v10 = vsel %vm243_vm3, 1.0, %v736_v7  ;;  %vm246_vm9 = vcmp.le.f32.partialorder %v914_v28, %v1001_v60  ;;  %v583_v22 = vsel %vm244_vm4, 1.0, %v736_v7 }
  0xbe   :  { %v434_v27 = vadd.f32 %v581_v9, %v573_v12  ;;  %v435_v31 = vadd.f32 %v582_v10, %v574_v17  ;;  %vm247_vm13 = vcmp.le.f32.partialorder %v916_v29, %v1001_v60  ;;  %v584_v39 = vsel %vm245_vm8, 1.0, %v736_v7  ;;  %v635_v10 = vpop.eup %634  ;;  %v1240_v29 = vld [vmem:[#allocation15_spill] sm:$0xff] }
  0xbf   :  { %vm248_vm14 = vcmp.le.f32.partialorder %v918_v30, %v1001_v60  ;;  %v585_v5 = vsel %vm246_vm9, 1.0, %v736_v7  ;;  %v436_v43 = vadd.f32 %v583_v22, %v575_v38  ;;  %vm249_vm15 = vcmp.le.f32.partialorder %v920_v33, %v1001_v60 }
  0xc0   :  { %v517_v20 = vadd.f32 %v435_v31, %v434_v27  ;;  %v578_v9 = vsel %vm239_vm10, 1.0, %v736_v7  ;;  %v437_v12 = vadd.f32 %v584_v39, %v576_v45  ;;  %v274_v22 = vsel %vm242_vm2, %v955_v6, 0.0 }
  0xc1   :  { %v275_v27 = vsel %vm243_vm3, %v959_v8, 0.0  ;;  %v586_v31 = vsel %vm247_vm13, 1.0, %v736_v7  ;;  %v587_v38 = vsel %vm248_vm14, 1.0, %v736_v7  ;;  %v438_v39 = vadd.f32 %v585_v5, %v577_v55 }
  0xc2   :  { %v518_v17 = vadd.f32 %v517_v20, %v436_v43  ;;  %v266_v43 = vsel %vm234_vm0, %v924_v34, 0.0  ;;  %v267_v8 = vsel %vm235_vm1, %v928_v35, 0.0  ;;  %v276_v20 = vsel %vm244_vm4, %v963_v14, 0.0 }
  0xc3   :  { %v370_v45 = vadd.f32 %v274_v22, %v266_v43  ;;  %v579_v5 = vsel %vm240_vm11, 1.0, %v736_v7  ;;  %v580_v34 = vsel %vm241_vm12, 1.0, %v736_v7  ;;  %v588_v55 = vsel %vm249_vm15, 1.0, %v736_v7 }
  0xc4   :  { %v519_v6 = vadd.f32 %v518_v17, %v437_v12  ;;  %v371_v12 = vadd.f32 %v275_v27, %v267_v8  ;;  %v439_v35 = vadd.f32 %v586_v31, %v578_v9  ;;  %v268_v14 = vsel %vm236_vm5, %v932_v36, 0.0 }
  0xc5   :  { %v277_v22 = vsel %vm245_vm8, %v969_v46, 0.0  ;;  %v440_v43 = vadd.f32 %v587_v38, %v579_v5  ;;  %v278_v57 = vsel %vm246_vm9, %v972_v47, 0.0  ;;  %v372_v7 = vadd.f32 %v276_v20, %v268_v14 }
  0xc6   :  { %v520_v17 = vadd.f32 %v519_v6, %v438_v39  ;;  %v469_v27 = vadd.f32 %v371_v12, %v370_v45  ;;  %v441_v9 = vadd.f32 %v588_v55, %v580_v34  ;;  %v269_v36 = vsel %vm237_vm6, %v936_v40, 0.0 }
  0xc7   :  { %v270_v46 = vsel %vm238_vm7, %v940_v41, 0.0  ;;  %v271_v38 = vsel %vm239_vm10, %v944_v3, 0.0  ;;  %v373_v47 = vadd.f32 %v277_v22, %v269_v36  ;;  %v322_v6 = vsel %vm242_vm2, %v997_v59, 0.0 }
  0xc8   :  { %v521_v31 = vadd.f32 %v520_v17, %v439_v35  ;;  %v470_v39 = vadd.f32 %v469_v27, %v372_v7  ;;  %v279_v40 = vsel %vm247_vm13, %v975_v25, 0.0  ;;  %v374_v20 = vadd.f32 %v278_v57, %v270_v46 }
  0xc9   :  { %v323_v41 = vsel %vm243_vm3, %v999_v58, 0.0  ;;  %v314_v45 = vsel %vm234_vm0, %v983_v49, 0.0  ;;  %v315_v21 = vsel %vm235_vm1, %v985_v50, 0.0  ;;  %v324_v25 = vsel %vm244_vm4, %v1005_v61, 0.0 }
  0xca   :  { %v522_v8 = vadd.f32 %v521_v31, %v440_v43  ;;  %v471_v3 = vadd.f32 %v470_v39, %v373_v47  ;;  %v280_v23 = vsel %vm248_vm14, %v978_v32, 0.0  ;;  %v402_v59 = vadd.f32 %v322_v6, %v314_v45 }
  0xcb   :  { %v403_v58 = vadd.f32 %v323_v41, %v315_v21  ;;  %v375_v56 = vadd.f32 %v279_v40, %v271_v38  ;;  %v325_v24 = vsel %vm245_vm8, %v1007_v62, 0.0  ;;  %v272_v32 = vsel %vm240_vm11, %v948_v4, 0.0 }
  0xcc   :  { %v523_v57 = vadd.f32 %v522_v8, %v441_v9  ;;  %v472_v49 = vadd.f32 %v471_v3, %v374_v20  ;;  %v281_v50 = vsel %vm249_vm15, %v981_v37, 0.0  ;;  %v404_v61 = vadd.f32 %v324_v25, %v316_v2 }
  0xcd   :  { %v493_v5 = vadd.f32 %v403_v58, %v402_v59  ;;  %v376_v11 = vadd.f32 %v280_v23, %v272_v32  ;;  %v317_v26 = vsel %vm237_vm6, %v989_v51, 0.0  ;;  %v326_v62 = vsel %vm246_vm9, %v1009_v63, 0.0 }
  0xce   :  { %524 = vadd.xlane.f32.xlu0 %v523_v57  ;;  %v473_v52 = vadd.f32 %v472_v49, %v375_v56  ;;  %v273_v4 = vsel %vm241_vm12, %v951_v42, 0.0  ;;  %v313_v37 = vmul.f32 0.6931472, %v635_v10  ;;  %v405_v34 = vadd.f32 %v325_v24, %v317_v26 }
  0xcf   :  { %v494_v55 = vadd.f32 %v493_v5, %v404_v61  ;;  %v377_v12 = vadd.f32 %v281_v50, %v273_v4  ;;  %v327_v28 = vsel %vm247_vm13, %v1023_v0, 0.0  ;;  %v406_v51 = vadd.f32 %v326_v62, %v318_v13 }
  0xd0   :  { %v474_v35 = vadd.f32 %v473_v52, %v376_v11  ;;  %v297_v42 = vmul.f32 0.6931472, %v1067_v48  ;;  %v319_v10 = vsel %vm239_vm10, %v993_v54, 0.0  ;;  %v328_v15 = vsel %vm248_vm14, %v1025_v1, 0.0 }
  0xd1   :  { %v495_v63 = vadd.f32 %v494_v55, %v405_v34  ;;  %v407_v53 = vadd.f32 %v327_v28, %v319_v10  ;;  %v320_v0 = vsel %vm240_vm11, %v1240_v29, 0.0  ;;  %v329_v48 = vsel %vm249_vm15, %v313_v37, 0.0 }
  0xd2   :  { %v475_v17 = vadd.f32 %v474_v35, %v377_v12  ;;  %v408_v22 = vadd.f32 %v328_v15, %v320_v0  ;;  %v321_v54 = vsel %vm241_vm12, %v297_v42, 0.0  ;;  %v533_v21 = vlaneseq }
  0xd3   :  { %v496_v14 = vadd.f32 %v495_v63, %v406_v51  ;;  %v409_v30 = vadd.f32 %v329_v48, %v321_v54 }
  0xd4   :  { %476 = vadd.xlane.f32.xlu1 %v475_v17  ;;  %v534_v25 = vand.u32 127, %v533_v21 }
  0xd5   :  { %v497_v16 = vadd.f32 %v496_v14, %v407_v53 }
  0xd6   :  { %vm537_vm0 = vcmp.eq.s32.totalorder %v534_v25, 2  ;;  %vm536_vm1 = vcmp.eq.s32.totalorder %v534_v25, 1  ;;  %vm535_vm2 = vcmp.eq.s32.totalorder %v534_v25, 0 }
  0xd7   :  { %v498_v1 = vadd.f32 %v497_v16, %v408_v22 }
  0xd9   :  { %v499_v43 = vadd.f32 %v498_v1, %v409_v30 }
  0xdb   :  { %500 = vadd.xlane.f32.xlu1 %v499_v43 }
 0x15b   :  { %v525_v7 = vpop.xlane.xlu0 %524 }
 0x15c   :  { %v526_v27 = vrot.slane %v525_v7, 4 }
 0x15e   :  { %v527_v18 = vadd.f32 %v526_v27, %v525_v7 }
 0x160   :  { %v528_v38 = vrot.slane %v527_v18, 2 }
 0x161   :  { %v477_v9 = vpop.xlane.xlu1 %476 }
 0x162   :  { %v478_v31 = vrot.slane %v477_v9, 4  ;;  %v529_v8 = vadd.f32 %v528_v38, %v527_v18 }
 0x164   :  { %v479_v36 = vadd.f32 %v478_v31, %v477_v9  ;;  %v530_v20 = vrot.slane %v529_v8, 1 }
 0x166   :  { %v480_v46 = vrot.slane %v479_v36, 2  ;;  %v531_v45 = vadd.f32 %v530_v20, %v529_v8 }
 0x168   :  { %v501_v33 = vpop.xlane.xlu1 %500  ;;  %v481_v60 = vadd.f32 %v480_v46, %v479_v36 }
 0x169   :  { %v502_v47 = vrot.slane %v501_v33, 4 }
 0x16a   :  { %v482_v39 = vrot.slane %v481_v60, 1 }
 0x16b   :  { %v503_v6 = vadd.f32 %v502_v47, %v501_v33 }
 0x16c   :  { %v483_v19 = vadd.f32 %v482_v39, %v481_v60 }
 0x16d   :  { %v504_v44 = vrot.slane %v503_v6, 2 }
 0x16e   :  { %589 = vpush %v483_v19 }
 0x16f   :  { %v505_v40 = vadd.f32 %v504_v44, %v503_v6 }
 0x171   :  { %v506_v41 = vrot.slane %v505_v40, 1 }
 0x173   :  { %v507_v3 = vadd.f32 %v506_v41, %v505_v40 }
 0x175   :  { %591 = vpush %v507_v3 }
 0x176   :  { %593 = vpush %v531_v45 }
 0x19f   :  { %s590_s2 = spop %589 }
 0x1a0   :  { %v542_v58 = vstv %s590_s2 }
 0x1a6   :  { %s592_s3 = spop %591 }
 0x1a7   :  { %v540_v57 = vstv %s592_s3  ;;  %s594_s27 = spop %593 }
 0x1a8   :  { %v538_v23 = vstv %s594_s27 }
 0x1a9   :  { %v539_v59 = vsel %vm537_vm0, %v538_v23, 0.0 }
 0x1aa   :  { %v541_v56 = vsel %vm536_vm1, %v540_v57, %v539_v59 }
 0x1ab   :  { %v543_v49 = vsel %vm535_vm2, %v542_v58, %v541_v56 }
 0x1ac   :  { %544 = vst [vmem:[#allocation11] sm:$0xff] %v543_v49 }
 0x1ad   :  { %713 = shalt.err (!%p710_p0)
}
 0x1ae   :  { %s714_s9 = scalar_lea.hbm %s1238_s4, 128 }
 0x1af   :  { %p715_p1 = scmp.ne.s32.totalorder %s1238_s4, %s714_s9  ;;  %p718_p2 = scmp.lt.u32.totalorder %s714_s9, %s1238_s4 }
 0x1b1   :  { %p720_p3 = pnand %p718_p2, %p715_p1 }
 0x1b3   :  { %723 = shalt.err (!%p720_p3)
}
 0x1b4   :  { %554 = dma.vmem_to_hbm [thread:$0]  %s552_s5, 128, %s1238_s4, [#allocation7]  }
 0x1b5   :  { %728 = dma.done.wait [#allocation7], 128  }
 0x1b6   :  { %729 = vsyncadd [#allocation7], 4294967168 }
 0x1b7   :  { %558 = vsyncpa [#allocation6], 1 }
 0x1b8   :  { %559 = vsyncpa [#allocation9], 1 }
 0x1b9   :  { %560 = vsyncpa [#allocation7], 1 }

</bundles_post_ra>
